<compile_context>
chip_gen: v6e
topology: v6e:2x2x1
jax: 0.10.0
libtpu: 0.0.40
codegen_flags: <defaults>
</compile_context>

<pallas_src>
import jax
import jax.numpy as jnp
from jax.experimental import pallas as pl
from jax.experimental.pallas import tpu as pltpu


def _ste_threshold_kernel(x_ref, s_ref, o_ref):
    # x_ref: (bn, C, T), s_ref: (bn, 1, T) -> mask broadcasts over channels.
    keep = s_ref[...] >= 0.5
    x = x_ref[...]
    o_ref[...] = jnp.where(keep, x, jnp.zeros_like(x))


def _round_up(v: int, m: int) -> int:
    return ((v + m - 1) // m) * m


def ste_threshold(x, s_map):
    """x: (N, C, H, W), s_map: (N, 1, H, W). Returns x * (s_map >= 0.5)."""
    N, C, H, W = x.shape
    assert s_map.shape == (N, 1, H, W), "s_map must be (N, 1, H, W)"
    HW = H * W

    itemsize_x = jnp.dtype(x.dtype).itemsize
    itemsize_s = jnp.dtype(s_map.dtype).itemsize

    # --- choose the HW lane tile --------------------------------------------
    hw128 = _round_up(HW, 128)
    # Per grid step (double-buffered): 2 * (x block + out block + s block).
    vmem_budget = 8 * 1024 * 1024  # bytes; safe under v5e's 16 MiB scoped default
    per_lane_bytes = 2 * (2 * C * itemsize_x + itemsize_s)
    thw_by_budget = max(128, (vmem_budget // per_lane_bytes) // 128 * 128)
    THW = min(hw128, 2048, thw_by_budget)
    # TODO(synk): if C is so large that even THW=128 exceeds the budget, tile C too.
    HW_pad = _round_up(HW, THW)

    # --- flatten + pad so stores are full, unmasked 128-lane vectors ---------
    x3 = x.reshape(N, C, HW)
    s3 = s_map.reshape(N, 1, HW)
    if HW_pad != HW:
        pad = HW_pad - HW
        x3 = jnp.pad(x3, ((0, 0), (0, 0), (0, pad)))
        s3 = jnp.pad(s3, ((0, 0), (0, 0), (0, pad)))  # pad < 0.5 -> masked to 0

    total_bytes = N * C * HW_pad * itemsize_x
    out_shape = jax.ShapeDtypeStruct((N, C, HW_pad), x.dtype)

    if total_bytes <= (1 << 20):
        # Tiny problem: one block covering everything, single grid step —
        # per-step pipeline overhead dominates otherwise.
        out = pl.pallas_call(
            _ste_threshold_kernel,
            out_shape=out_shape,
            grid_spec=pltpu.PrefetchScalarGridSpec(
                num_scalar_prefetch=0,
                grid=(1,),
                in_specs=[
                    pl.BlockSpec((N, C, HW_pad), lambda i: (0, 0, 0)),
                    pl.BlockSpec((N, 1, HW_pad), lambda i: (0, 0, 0)),
                ],
                out_specs=pl.BlockSpec((N, C, HW_pad), lambda i: (0, 0, 0)),
            ),
            compiler_params=pltpu.CompilerParams(
                dimension_semantics=("arbitrary",)
            ),
        )(x3, s3)
    else:
        num_hw_tiles = HW_pad // THW
        out = pl.pallas_call(
            _ste_threshold_kernel,
            out_shape=out_shape,
            grid_spec=pltpu.PrefetchScalarGridSpec(
                num_scalar_prefetch=0,
                grid=(N, num_hw_tiles),
                in_specs=[
                    pl.BlockSpec((1, C, THW), lambda n, t: (n, 0, t)),
                    pl.BlockSpec((1, 1, THW), lambda n, t: (n, 0, t)),
                ],
                out_specs=pl.BlockSpec((1, C, THW), lambda n, t: (n, 0, t)),
            ),
            compiler_params=pltpu.CompilerParams(
                dimension_semantics=("parallel", "parallel")
            ),
        )(x3, s3)

    if HW_pad != HW:
        out = out[:, :, :HW]
    return out.reshape(N, C, H, W)


if __name__ == "__main__":
    key = jax.random.PRNGKey(0)
    k1, k2 = jax.random.split(key)

    N, C, H, W = 2, 4, 16, 16
    x = jax.random.normal(k1, (N, C, H, W), dtype=jnp.float32)
    s_map = jax.random.uniform(k2, (N, 1, H, W), dtype=jnp.float32)

    out = ste_threshold(x, s_map)
    jax.block_until_ready(out)

    # Reference check (pure JAX, same semantics as the PyTorch forward).
    ref = x * (jnp.broadcast_to(s_map, x.shape) >= 0.5).astype(x.dtype)
    assert jnp.array_equal(out, ref), "mismatch vs reference"

    # Exercise the tiled path too (large, non-128-aligned spatial dims).
    k3, k4 = jax.random.split(k2)
    Nl, Cl, Hl, Wl = 2, 64, 57, 57  # HW = 3249, not a multiple of 128
    xl = jax.random.normal(k3, (Nl, Cl, Hl, Wl), dtype=jnp.float32)
    sl = jax.random.uniform(k4, (Nl, 1, Hl, Wl), dtype=jnp.float32)
    outl = ste_threshold(xl, sl)
    jax.block_until_ready(outl)
    refl = xl * (jnp.broadcast_to(sl, xl.shape) >= 0.5).astype(xl.dtype)
    assert jnp.array_equal(outl, refl), "mismatch vs reference (tiled path)"

    print("KERNEL_OK")
</pallas_src>

<mosaic_0001>
module attributes {stable_mosaic.version = 11 : i64} {
  func.func @_ste_threshold_kernel(%arg0: i32, %arg1: memref<2x4x256xf32, #tpu.memory_space<vmem>>, %arg2: memref<2x1x256xf32, #tpu.memory_space<vmem>>, %arg3: memref<2x4x256xf32, #tpu.memory_space<vmem>>) attributes {dimension_semantics = [#tpu.dimension_semantics<arbitrary>], iteration_bounds = array<i64: 1>, scalar_prefetch = 0 : i64, scratch_operands = 0 : i64, tpu.core_type = #tpu.core_type<tc>, window_params = [{pipeline_mode = #tpu.pipeline_mode<synchronous>, transform_indices = @transform_0, window_bounds = array<i64: 2, 4, 256>}, {pipeline_mode = #tpu.pipeline_mode<synchronous>, transform_indices = @transform_1, window_bounds = array<i64: 2, 1, 256>}, {pipeline_mode = #tpu.pipeline_mode<synchronous>, transform_indices = @transform_2, window_bounds = array<i64: 2, 4, 256>}]} {
    %c0 = arith.constant 0 : index
    %c0_0 = arith.constant 0 : index
    %c0_1 = arith.constant 0 : index
    %0 = vector.load %arg2[%c0, %c0_0, %c0_1] : memref<2x1x256xf32, #tpu.memory_space<vmem>>, vector<2x1x256xf32>
    %cst = arith.constant 5.000000e-01 : f32
    %1 = vector.broadcast %cst : f32 to vector<2x1x256xf32>
    %2 = arith.cmpf oge, %0, %1 : vector<2x1x256xf32>
    %c0_2 = arith.constant 0 : index
    %c0_3 = arith.constant 0 : index
    %c0_4 = arith.constant 0 : index
    %3 = vector.load %arg1[%c0_2, %c0_3, %c0_4] : memref<2x4x256xf32, #tpu.memory_space<vmem>>, vector<2x4x256xf32>
    %cst_5 = arith.constant 0.000000e+00 : f32
    %4 = vector.broadcast %cst_5 : f32 to vector<2x4x256xf32>
    %5 = vector.shape_cast %2 : vector<2x1x256xi1> to vector<2x1x256xi1>
    %6 = vector.broadcast %5 : vector<2x1x256xi1> to vector<2x4x256xi1>
    %7 = arith.select %6, %3, %4 : vector<2x4x256xi1>, vector<2x4x256xf32>
    %c0_6 = arith.constant 0 : index
    %c0_7 = arith.constant 0 : index
    %c0_8 = arith.constant 0 : index
    %8 = vector.load %arg3[%c0_6, %c0_7, %c0_8] : memref<2x4x256xf32, #tpu.memory_space<vmem>>, vector<2x4x256xf32>
    tpu.vector_store %arg3[%c0_6, %c0_7, %c0_8], %7 {strides = array<i32>} : memref<2x4x256xf32, #tpu.memory_space<vmem>>, vector<2x4x256xf32>,
    return
  }
  func.func @transform_0(%arg0: i32) -> (i32, i32, i32) {
    %c0_i32 = arith.constant 0 : i32
    %c0_i32_0 = arith.constant 0 : i32
    %c0_i32_1 = arith.constant 0 : i32
    %c0_i32_2 = arith.constant 0 : i32
    return %c0_i32, %c0_i32_0, %c0_i32_1 : i32, i32, i32
  }
  func.func @transform_1(%arg0: i32) -> (i32, i32, i32) {
    %c0_i32 = arith.constant 0 : i32
    %c0_i32_0 = arith.constant 0 : i32
    %c0_i32_1 = arith.constant 0 : i32
    %c0_i32_2 = arith.constant 0 : i32
    return %c0_i32, %c0_i32_0, %c0_i32_1 : i32, i32, i32
  }
  func.func @transform_2(%arg0: i32) -> (i32, i32, i32) {
    %c0_i32 = arith.constant 0 : i32
    %c0_i32_0 = arith.constant 0 : i32
    %c0_i32_1 = arith.constant 0 : i32
    %c0_i32_2 = arith.constant 0 : i32
    return %c0_i32, %c0_i32_0, %c0_i32_1 : i32, i32, i32
  }
}

</mosaic_0001>

<bundles_post_ra>
// kernel: tpu_custom_call.1
= control target key start
LH: loop header
LB: loop body
LE: loop exit
PB: predicated region body
PF: predicated region fallthrough
CT: control target
= control target key end

     0   :  { %7 = vsyncpa [#allocation3], 0  ;;  %s220_s0 = inlined_call_operand.hbm [shape: f32[2,4,256], index: 0, kind: input, shape index: {}]   ;;  %s221_s1 = inlined_call_operand.hbm [shape: f32[2,1,256], index: 1, kind: input, shape index: {}]   ;;  %s222_s2 = inlined_call_operand.hbm [shape: f32[2,4,256], index: 2, kind: output, shape index: {}]  }
   0x1   :  { %8 = vsyncpa [#allocation6], 0 }
   0x2   :  { %9 = vsyncpa [#allocation4], 0  ;;  %s182_s9 = smov [#allocation2]  }
   0x3   :  { %s15_s10 = sshll.u32 %s182_s9, 4  ;;  %s16_s10 = int_to_ptr.vmem [resolvable:$true] %s15_s10 }
   0x4   :  { %s124_s11 = scalar_lea.vmem %s16_s10, 256  ;;  %p129_p1 = scmp.lt.s32.totalorder %s16_s10, %s16_s10 }
   0x5   :  { %p125_p0 = scmp.ne.s32.totalorder %s16_s10, %s124_s11  ;;  %p130_p2 = scmp.lt.s32.totalorder %s124_s11, %s124_s11 }
   0x7   :  { %p131_p3 = por %p130_p2, %p129_p1 }
   0x9   :  { %p132_p4 = pnand %p131_p3, %p125_p0 }
   0xb   :  { %135 = shalt.err (!%p132_p4)
}
   0xc   :  { %s183_s12 = smov 128   ;;  %s184_s13 = smov 8  }
   0xd   :  { %21 = dma.hbm_to_vmem [thread:$0]  %s220_s0, 256, %s16_s10, [#allocation3], %s183_s12, %s183_s12, %s184_s13  }
   0xe   :  { %s185_s16 = smov [#allocation5]  }
   0xf   :  { %s27_s17 = sshll.u32 %s185_s16, 4  ;;  %s28_s17 = int_to_ptr.vmem [resolvable:$true] %s27_s17 }
  0x10   :  { %s144_s18 = scalar_lea.vmem %s28_s17, 64  ;;  %p149_p6 = scmp.lt.s32.totalorder %s28_s17, %s28_s17 }
  0x11   :  { %p145_p5 = scmp.ne.s32.totalorder %s28_s17, %s144_s18  ;;  %p150_p7 = scmp.lt.s32.totalorder %s144_s18, %s144_s18 }
  0x13   :  { %p151_p8 = por %p150_p7, %p149_p6 }
  0x15   :  { %p152_p9 = pnand %p151_p8, %p145_p5 }
  0x17   :  { %155 = shalt.err (!%p152_p9)
}
  0x18   :  { %s186_s19 = smov 32   ;;  %s187_s20 = smov 2  }
  0x19   :  { %33 = dma.hbm_to_vmem [thread:$0]  %s221_s1, 64, %s28_s17, [#allocation6], %s186_s19, %s186_s19, %s187_s20  }
  0x1a   :  { %176 = dma.done.wait [#allocation3], 256  }
  0x1b   :  { %177 = vsyncadd [#allocation3], 4294967040 }
  0x1c   :  { %178 = dma.done.wait [#allocation6], 64  }
  0x1d   :  { %179 = vsyncadd [#allocation6], 4294967232  ;;  %v48_v0 = vlaneseq  ;;  %v40_v4 = vld [vmem:[#allocation5] sm:$0x3]  ;;  %v44_v5 = vld [vmem:[#allocation2] sm:$0xff]  ;;  %v188_v8 = vmov 0  }
  0x1e   :  { %v41_v6 = vld [vmem:[#allocation5 + $0x2] sm:$0x3]  ;;  %vm42_vm0 = vcmp.ge.f32.partialorder %v40_v4, 0.5  ;;  %v45_v7 = vld [vmem:[#allocation2 + $0x8] sm:$0xff]  ;;  %v70_v10 = vcombine.high %v44_v5, %v44_v5  ;;  %s189_s0 = smov [#allocation7]  }
  0x1f   :  { %v49_v1 = vshrl.u32 %v48_v0, 7  ;;  %vm43_vm1 = vcmp.ge.f32.partialorder %v41_v6, 0.5  ;;  %v46_v9 = vsel %vm42_vm0, 1, %v188_v8  ;;  %v71_v12 = vcombine.high %v45_v7, %v45_v7  ;;  %s93_s1 = sshll.u32 %s189_s0, 4  ;;  %s94_s1 = int_to_ptr.vmem [resolvable:$true] %s93_s1 }
  0x20   :  { %v47_v11 = vsel %vm43_vm1, 1, %v188_v8  ;;  %s156_s23 = scalar_lea.vmem %s94_s1, 256  ;;  %p161_p11 = scmp.lt.s32.totalorder %s94_s1, %s94_s1 }
  0x21   :  { %v50_v2 = vsub.s32 0, %v49_v1  ;;  %v54_v3 = vsub.s32 1, %v49_v1  ;;  %p157_p10 = scmp.ne.s32.totalorder %s94_s1, %s156_s23  ;;  %p162_p12 = scmp.lt.s32.totalorder %s156_s23, %s156_s23 }
  0x23   :  { %v51_v13 = vrot.slane %v46_v9, %v50_v2  ;;  %v55_v14 = vrot.slane %v46_v9, %v54_v3  ;;  %v59_v15 = vrot.slane %v47_v11, %v50_v2  ;;  %v63_v16 = vrot.slane %v47_v11, %v54_v3  ;;  %p163_p13 = por %p162_p12, %p161_p11 }
  0x25   :  { %vm64_vm2 = vcmp.eq.s32.totalorder %v51_v13, 1  ;;  %vm65_vm3 = vcmp.eq.s32.totalorder %v55_v14, 1  ;;  %vm66_vm4 = vcmp.eq.s32.totalorder %v59_v15, 1  ;;  %vm67_vm5 = vcmp.eq.s32.totalorder %v63_v16, 1  ;;  %p164_p0 = pnand %p163_p13, %p157_p10 }
  0x26   :  { %v74_v17 = vsel %vm64_vm2, %v44_v5, 0.0  ;;  %v75_v18 = vsel %vm65_vm3, %v70_v10, 0.0  ;;  %v76_v19 = vsel %vm66_vm4, %v45_v7, 0.0  ;;  %v77_v20 = vsel %vm67_vm5, %v71_v12, 0.0 }
  0x27   :  { %v82_v21 = vcombine.low %v74_v17, %v75_v18  ;;  %v83_v22 = vcombine.low %v76_v19, %v77_v20 }
  0x29   :  { %86 = vst [vmem:[#allocation7] sm:$0xff] %v82_v21  ;;  %87 = vst [vmem:[#allocation7 + $0x8] sm:$0xff] %v83_v22 }
  0x2a   :  { %167 = shalt.err (!%p164_p0)
}
  0x2b   :  { %99 = dma.vmem_to_hbm [thread:$0]  %s94_s1, 256, %s222_s2, [#allocation4], %s183_s12, %s183_s12, %s184_s13  }
  0x2c   :  { %180 = dma.done.wait [#allocation4], 256  }
  0x2d   :  { %181 = vsyncadd [#allocation4], 4294967040 }
  0x2e   :  { %103 = vsyncpa [#allocation3], 1 }
  0x2f   :  { %104 = vsyncpa [#allocation6], 1 }
  0x30   :  { %105 = vsyncpa [#allocation4], 1 }

</bundles_post_ra>
